<compile_context>
chip_gen: v5e
topology: v5e:2x2
jax: 0.10.0
libtpu: 0.0.40
codegen_flags: <defaults>
</compile_context>

<pallas_src>
import jax
import jax.numpy as jnp
from jax.experimental import pallas as pl
from jax.experimental.pallas import tpu as pltpu


def _round_up(x, m):
    return (x + m - 1) // m * m


def _linear_kernel(x_ref, w_ref, b_ref, o_ref):
    # logits = x @ W + b   (MXU matmul, bf16 inputs, f32 accumulation)
    acc = jnp.dot(x_ref[...], w_ref[...], preferred_element_type=jnp.float32)
    o_ref[...] = (acc + b_ref[...]).astype(o_ref.dtype)


def ner_head_pallas(x, weight, bias, tile_m=512):
    """x: [B, S, H] float32; weight: [H, C1] f32; bias: [C1] f32 -> [B, S, C1] f32."""
    B, S, H = x.shape
    C1 = weight.shape[1]
    M = B * S

    # Pad output lane dimension to a multiple of 128 -> unmasked lane-dense
    # stores and full use of MXU result lanes.  Padding columns are zero and
    # sliced off after the call.
    C1p = _round_up(C1, 128)

    # Row tile: up to `tile_m` rows, but never larger than the (8-aligned)
    # padded row count; last two block dims stay (8,128)-legal or full-extent.
    tm = min(tile_m, _round_up(M, 8))
    Mp = _round_up(M, tm)

    # bf16 activations & weight (memory-bound op: halves HBM read traffic).
    x2d = x.reshape(M, H).astype(jnp.bfloat16)
    if Mp != M:
        x2d = jnp.pad(x2d, ((0, Mp - M), (0, 0)))
    w_p = jnp.pad(weight.astype(jnp.bfloat16), ((0, 0), (0, C1p - C1)))
    b_p = jnp.pad(bias.astype(jnp.float32), (0, C1p - C1)).reshape(1, C1p)

    grid = (Mp // tm,)
    cost = pl.CostEstimate(
        flops=2 * Mp * H * C1p,
        transcendentals=0,
        bytes_accessed=Mp * H * 2 + H * C1p * 2 + C1p * 4 + Mp * C1p * 4,
    )

    logits2d = pl.pallas_call(
        _linear_kernel,
        out_shape=jax.ShapeDtypeStruct((Mp, C1p), jnp.float32),
        grid=grid,
        in_specs=[
            pl.BlockSpec((tm, H), lambda i: (i, 0)),    # row tile, pipelined
            pl.BlockSpec((H, C1p), lambda i: (0, 0)),   # weight: VMEM-resident
            pl.BlockSpec((1, C1p), lambda i: (0, 0)),   # bias: VMEM-resident
        ],
        out_specs=pl.BlockSpec((tm, C1p), lambda i: (i, 0)),
        compiler_params=pltpu.CompilerParams(
            dimension_semantics=("parallel",),          # 2-TC sharding on v7x
            vmem_limit_bytes=32 * 1024 * 1024,
        ),
        cost_estimate=cost,
    )(x2d, w_p, b_p)

    return logits2d[:M, :C1].reshape(B, S, C1)


class NerModelJax:
    """JAX/Pallas re-implementation of NerModel's forward semantics."""

    def __init__(self, vocab_size, hidden_size, num_classes, is_training=False,
                 key=jax.random.PRNGKey(0)):
        self.is_training = is_training
        self.hidden_size = hidden_size
        self.num_out = num_classes + 1  # nn.Linear(hidden_size, num_classes + 1)

        k_emb, k_w, k_b = jax.random.split(key, 3)
        # Deterministic stand-in for the pretrained BERT encoder output.
        # TODO(synk): the HuggingFace AutoModelForTokenClassification backbone
        # (and its forward-hook capture) has no Pallas equivalent without
        # checkpoint weights; replaced by a deterministic embedding lookup.
        self.embed_table = jax.random.normal(
            k_emb, (vocab_size, hidden_size), dtype=jnp.float32) * 0.02
        # nn.Linear init (uniform(-1/sqrt(H), 1/sqrt(H))), stored as [H, C+1].
        limit = 1.0 / jnp.sqrt(jnp.float32(hidden_size))
        self.lin_w = jax.random.uniform(
            k_w, (hidden_size, self.num_out), dtype=jnp.float32,
            minval=-limit, maxval=limit)
        self.lin_b = jax.random.uniform(
            k_b, (self.num_out,), dtype=jnp.float32,
            minval=-limit, maxval=limit)

    def forward(self, input_ids, attention_mask=None, segment_ids=None):
        # Synthetic encoder_out (captured-hook tensor) -- shape [B, S, H].
        # TODO(synk): for the real backbone the gather could be fused into the
        # kernel via PrefetchScalarGridSpec to avoid one HBM round-trip.
        x = jnp.take(self.embed_table, input_ids, axis=0)
        if self.is_training:
            # TODO(synk): dropout(p=0.2) on the training path not applied
            # (module is exercised in eval mode here).
            pass
        logits = ner_head_pallas(x, self.lin_w, self.lin_b)
        return logits


if __name__ == "__main__":
    key = jax.random.PRNGKey(0)
    batch, seq, hidden, vocab, num_classes = 2, 8, 32, 64, 5

    model = NerModelJax(vocab_size=vocab, hidden_size=hidden,
                        num_classes=num_classes, is_training=False, key=key)

    k_ids = jax.random.fold_in(key, 1)
    input_ids = jax.random.randint(k_ids, (batch, seq), 0, vocab, dtype=jnp.int32)
    attention_mask = jnp.ones((batch, seq), dtype=jnp.int32)

    logits = model.forward(input_ids, attention_mask=attention_mask)
    logits = jax.block_until_ready(logits)

    # Cross-check against a plain-JAX reference of the same head (bf16 inputs,
    # f32 accumulation -- matches the kernel's MXU precision).
    x_ref = jnp.take(model.embed_table, input_ids, axis=0)
    x_bf = x_ref.astype(jnp.bfloat16).astype(jnp.float32)
    w_bf = model.lin_w.astype(jnp.bfloat16).astype(jnp.float32)
    ref = x_bf @ w_bf + model.lin_b
    assert logits.shape == (batch, seq, num_classes + 1)
    assert jnp.allclose(logits, ref, atol=1e-4, rtol=1e-4)

    # Also sanity-check against the full-f32 reference (bf16 rounding only).
    ref_f32 = x_ref @ model.lin_w + model.lin_b
    assert jnp.allclose(logits, ref_f32, atol=5e-3, rtol=5e-2)

    print("KERNEL_OK")
</pallas_src>

<mosaic_0001>
module attributes {stable_mosaic.version = 11 : i64} {
  func.func @_linear_kernel(%arg0: i32, %arg1: memref<16x32xbf16, #tpu.memory_space<vmem>>, %arg2: memref<32x128xbf16, #tpu.memory_space<vmem>>, %arg3: memref<1x128xf32, #tpu.memory_space<vmem>>, %arg4: memref<16x128xf32, #tpu.memory_space<vmem>>) attributes {dimension_semantics = [#tpu.dimension_semantics<parallel>], iteration_bounds = array<i64: 1>, scalar_prefetch = 0 : i64, scratch_operands = 0 : i64, tpu.core_type = #tpu.core_type<tc>, window_params = [{transform_indices = @transform_0, window_bounds = array<i64: 16, 32>}, {pipeline_mode = #tpu.pipeline_mode<synchronous>, transform_indices = @transform_1, window_bounds = array<i64: 32, 128>}, {pipeline_mode = #tpu.pipeline_mode<synchronous>, transform_indices = @transform_2, window_bounds = array<i64: 1, 128>}, {transform_indices = @transform_3, window_bounds = array<i64: 16, 128>}]} {
    %c0 = arith.constant 0 : index
    %c0_0 = arith.constant 0 : index
    %0 = vector.load %arg1[%c0, %c0_0] : memref<16x32xbf16, #tpu.memory_space<vmem>>, vector<16x32xbf16>
    %c0_1 = arith.constant 0 : index
    %c0_2 = arith.constant 0 : index
    %1 = vector.load %arg2[%c0_1, %c0_2] : memref<32x128xbf16, #tpu.memory_space<vmem>>, vector<32x128xbf16>
    %cst = arith.constant dense<0.000000e+00> : vector<16x128xf32>
    %2 = tpu.matmul %0, %1, %cst {dimension_numbers = #tpu.dot_dimension_numbers<[1], [0], [0], [1], [0, 0, 1, 1], [], []>} : vector<16x32xbf16>, vector<32x128xbf16>, vector<16x128xf32> -> vector<16x128xf32>
    %c0_3 = arith.constant 0 : index
    %c0_4 = arith.constant 0 : index
    %3 = vector.load %arg3[%c0_3, %c0_4] : memref<1x128xf32, #tpu.memory_space<vmem>>, vector<1x128xf32>
    %4 = vector.broadcast %3 : vector<1x128xf32> to vector<16x128xf32>
    %5 = arith.addf %2, %4 : vector<16x128xf32>
    %c0_5 = arith.constant 0 : index
    %c0_6 = arith.constant 0 : index
    %6 = vector.load %arg4[%c0_5, %c0_6] : memref<16x128xf32, #tpu.memory_space<vmem>>, vector<16x128xf32>
    tpu.vector_store %arg4[%c0_5, %c0_6], %5 {strides = array<i32>} : memref<16x128xf32, #tpu.memory_space<vmem>>, vector<16x128xf32>,
    return
  }
  func.func @transform_0(%arg0: i32) -> (i32, i32) {
    %c0_i32 = arith.constant 0 : i32
    %c0_i32_0 = arith.constant 0 : i32
    return %arg0, %c0_i32 : i32, i32
  }
  func.func @transform_1(%arg0: i32) -> (i32, i32) {
    %c0_i32 = arith.constant 0 : i32
    %c0_i32_0 = arith.constant 0 : i32
    %c0_i32_1 = arith.constant 0 : i32
    return %c0_i32, %c0_i32_0 : i32, i32
  }
  func.func @transform_2(%arg0: i32) -> (i32, i32) {
    %c0_i32 = arith.constant 0 : i32
    %c0_i32_0 = arith.constant 0 : i32
    %c0_i32_1 = arith.constant 0 : i32
    return %c0_i32, %c0_i32_0 : i32, i32
  }
  func.func @transform_3(%arg0: i32) -> (i32, i32) {
    %c0_i32 = arith.constant 0 : i32
    %c0_i32_0 = arith.constant 0 : i32
    return %arg0, %c0_i32 : i32, i32
  }
}

</mosaic_0001>

<bundles_post_ra>
// kernel: tpu_custom_call.1
= control target key start
LH: loop header
LB: loop body
LE: loop exit
PB: predicated region body
PF: predicated region fallthrough
CT: control target
= control target key end

     0   :  { %8 = vsyncpa [#allocation3], 0  ;;  %s256_s0 = inlined_call_operand.hbm [shape: bf16[16,32], index: 0, kind: input, shape index: {}]   ;;  %s257_s1 = inlined_call_operand.hbm [shape: bf16[32,128], index: 1, kind: input, shape index: {}]   ;;  %s258_s2 = inlined_call_operand.vmem [shape: f32[1,128], index: 2, kind: input, shape index: {}]   ;;  %s259_s3 = inlined_call_operand.hbm [shape: f32[16,128], index: 3, kind: output, shape index: {}]  }
   0x1   :  { %9 = vsyncpa [#allocation6], 0 }
   0x2   :  { %10 = vsyncpa [#allocation4], 0  ;;  %s15_s14 = sshll.u32 %s256_s0, 4  ;;  %s217_s15 = smov [#allocation2]   ;;  %s16_s14 = int_to_ptr.hbm [resolvable:$true] %s15_s14 }
   0x3   :  { %s17_s16 = sshll.u32 %s217_s15, 4  ;;  %s28_s19 = sshll.u32 %s257_s1, 4  ;;  %s18_s16 = int_to_ptr.vmem [resolvable:$true] %s17_s16  ;;  %s29_s19 = int_to_ptr.hbm [resolvable:$true] %s28_s19 }
   0x4   :  { %s218_s20 = smov 64   ;;  %s219_s21 = smov 4  }
   0x5   :  { %23 = dma.hbm_to_vmem [thread:$0]  %s16_s14, 128, %s18_s16, [#allocation3], %s218_s20, %s218_s20, %s219_s21  }
   0x6   :  { %s220_s22 = smov [#allocation5]  }
   0x7   :  { %s30_s23 = sshll.u32 %s220_s22, 4  ;;  %s31_s23 = int_to_ptr.vmem [resolvable:$true] %s30_s23 }
   0x8   :  { %36 = dma.hbm_to_vmem [thread:$0]  %s29_s19, 256, %s31_s23, [#allocation6], %s218_s20, %s218_s20, %s219_s21  }
   0x9   :  { %211 = dma.done.wait [#allocation3], 128  }
   0xa   :  { %212 = vsyncadd [#allocation3], 4294967168 }
   0xb   :  { %213 = dma.done.wait [#allocation6], 256  }
   0xc   :  { %214 = vsyncadd [#allocation6], 4294967040  ;;  %v130_v0 = vld [vmem:[#allocation5 + $0x8] sm:$0xff]  ;;  %v129_v1 = vld [vmem:[#allocation5] sm:$0xff]  ;;  %vm75_vm0 = vcmask 261120   ;;  %s221_s24 = smov [#allocation7]  }
   0xd   :  { %85 = vmatpush.bf16.msra.mxu0 %v130_v0  ;;  %v128_v2 = vld [vmem:[#allocation2] sm:$0xff]  ;;  %s99_s25 = sshll.u32 %s221_s24, 4  ;;  %s101_s28 = sshll.u32 %s259_s3, 4  ;;  %s100_s25 = int_to_ptr.vmem [resolvable:$true] %s99_s25  ;;  %s102_s28 = int_to_ptr.hbm [resolvable:$true] %s101_s28 }
   0xe   :  { %v138_v3 = vld [vmem:[%s258_s2] ss:$0 sm:$0xff]  ;;  %s222_s29 = smov 128   ;;  %s223_s30 = smov 8  }
  0x11   :  { %86 = vmatpush.bf16.msra.mxu0 %v129_v1 }
  0x14   :  { %127 = vmatmul.msk.bf16.vlgmr.msra.gmra.mxu0 %vm75_vm0, %v128_v2 }
  0x91   :  { %v88_v4 = vpop.f32.mrf.mxu0 }
  0x92   :  { %v89_v5 = vadd.f32 %v138_v3, %v88_v4 }
  0x94   :  { %93 = vst [vmem:[#allocation7] sm:$0xff] %v89_v5 }
  0x99   :  { %v90_v6 = vpop.f32.mrf.mxu0 }
  0x9a   :  { %v91_v7 = vadd.f32 %v138_v3, %v90_v6 }
  0x9c   :  { %94 = vst [vmem:[#allocation7 + $0x8] sm:$0xff] %v91_v7 }
  0x9d   :  { %107 = dma.vmem_to_hbm [thread:$0]  %s100_s25, 256, %s102_s28, [#allocation4], %s222_s29, %s222_s29, %s223_s30  }
  0x9e   :  { %215 = dma.done.wait [#allocation4], 256  }
  0x9f   :  { %216 = vsyncadd [#allocation4], 4294967040 }
  0xa0   :  { %112 = vsyncpa [#allocation3], 1 }
  0xa1   :  { %113 = vsyncpa [#allocation6], 1 }
  0xa2   :  { %114 = vsyncpa [#allocation4], 1 }

</bundles_post_ra>
